<compile_context>
chip_gen: v5e
topology: v5e:2x2
jax: 0.10.0
libtpu: 0.0.40
codegen_flags: <defaults>
</compile_context>

<pallas_src>
import math
from functools import partial

import jax
import jax.numpy as jnp
from jax import lax
from jax.experimental import pallas as pl
from jax.experimental.pallas import tpu as pltpu

SCALE = 1.0 / math.sqrt(50.0)  # torch.sqrt(torch.tensor(50).float()); python float -> baked in


def _softmax_lastdim(x):
    m = jnp.max(x, axis=-1, keepdims=True)
    e = jnp.exp(x - m)
    s = jnp.sum(e, axis=-1, keepdims=True)
    # exact reciprocal keeps the 1e-5 tolerance; still lands off the VPU divide path.
    return e * pl.reciprocal(s, approx=False)


def cross_attention_kernel(d1_ref, d2_ref, w_ref, b_ref, o1_ref, o2_ref, *, hidden_dim):
    d1 = d1_ref[...]   # [N1, D]
    d2 = d2_ref[...]   # [N2, D]
    w = w_ref[...]     # [2H, D]  (torch layout; rows 0:H = Q_layer, H:2H = KV_layer)
    b = b_ref[...]     # [1, 2H]

    # Fused projections: one matmul per drug tensor, contracting the last dims
    # (weights are NOT transposed anywhere).
    dnums = (((1,), (1,)), ((), ()))
    p1 = lax.dot_general(d1, w, dnums, preferred_element_type=jnp.float32) + b  # [N1, 2H]
    p2 = lax.dot_general(d2, w, dnums, preferred_element_type=jnp.float32) + b  # [N2, 2H]

    q1, kv1 = p1[:, :hidden_dim], p1[:, hidden_dim:]   # Q(drug1), K/V(drug1)
    q2, kv2 = p2[:, :hidden_dim], p2[:, hidden_dim:]   # Q(drug2), K/V(drug2)

    # Direction 1: Q1 attends over drug2. Contract last dims -> no kv2.T temp.
    s1 = lax.dot_general(q1, kv2, dnums, preferred_element_type=jnp.float32) * SCALE  # [N1, N2]
    w1 = _softmax_lastdim(s1)
    o1_ref[...] = jnp.dot(w1, kv2, preferred_element_type=jnp.float32)                # [N1, H]

    # Direction 2: Q2 attends over drug1.
    s2 = lax.dot_general(q2, kv1, dnums, preferred_element_type=jnp.float32) * SCALE  # [N2, N1]
    w2 = _softmax_lastdim(s2)
    o2_ref[...] = jnp.dot(w2, kv1, preferred_element_type=jnp.float32)                # [N2, H]


@jax.jit
def cross_attention(drug1, drug2, wq, bq, wkv, bkv):
    """drug1: [N1, D], drug2: [N2, D], wq/wkv: [H, D] (torch layout), bq/bkv: [H]."""
    n1, _ = drug1.shape
    n2, _ = drug2.shape
    h = wq.shape[0]

    # Fuse the two Linear layers: one weight slab [2H, D], one bias [1, 2H].
    w_cat = jnp.concatenate(
        [jnp.asarray(wq, jnp.float32), jnp.asarray(wkv, jnp.float32)], axis=0)      # [2H, D]
    b_cat = jnp.concatenate(
        [jnp.asarray(bq, jnp.float32), jnp.asarray(bkv, jnp.float32)], axis=0
    ).reshape(1, 2 * h)                                                              # [1, 2H]

    vmem = pl.BlockSpec(memory_space=pltpu.MemorySpace.VMEM)
    out1, out2 = pl.pallas_call(
        partial(cross_attention_kernel, hidden_dim=h),
        out_shape=(
            jax.ShapeDtypeStruct((n1, h), jnp.float32),
            jax.ShapeDtypeStruct((n2, h), jnp.float32),
        ),
        in_specs=[vmem] * 4,
        out_specs=(vmem, vmem),
    )(jnp.asarray(drug1, jnp.float32), jnp.asarray(drug2, jnp.float32), w_cat, b_cat)
    return out1, out2


def _reference(drug1, drug2, wq, bq, wkv, bkv):
    """Pure-JAX reference mirroring the PyTorch forward exactly."""
    q1 = drug1 @ wq.T + bq
    k2 = drug2 @ wkv.T + bkv
    v2 = k2
    w1 = jax.nn.softmax((q1 @ k2.T) * SCALE, axis=1)
    out1 = w1 @ v2
    q2 = drug2 @ wq.T + bq
    k1 = drug1 @ wkv.T + bkv
    v1 = k1
    w2 = jax.nn.softmax((q2 @ k1.T) * SCALE, axis=1)
    out2 = w2 @ v1
    return out1, out2


if __name__ == "__main__":
    key = jax.random.PRNGKey(0)
    k1, k2, k3, k4, k5, k6 = jax.random.split(key, 6)

    N1, N2 = 8, 8          # number of drug rows (seq)
    INPUT_DIM = 16
    HIDDEN_DIM = 32

    drug1 = jax.random.normal(k1, (N1, INPUT_DIM), jnp.float32)
    drug2 = jax.random.normal(k2, (N2, INPUT_DIM), jnp.float32)

    # Deterministic parameter init mimicking nn.Linear (uniform +/- 1/sqrt(fan_in)).
    bound = 1.0 / math.sqrt(float(INPUT_DIM))
    wq = jax.random.uniform(k3, (HIDDEN_DIM, INPUT_DIM), jnp.float32, -bound, bound)
    bq = jax.random.uniform(k4, (HIDDEN_DIM,), jnp.float32, -bound, bound)
    wkv = jax.random.uniform(k5, (HIDDEN_DIM, INPUT_DIM), jnp.float32, -bound, bound)
    bkv = jax.random.uniform(k6, (HIDDEN_DIM,), jnp.float32, -bound, bound)

    out1, out2 = cross_attention(drug1, drug2, wq, bq, wkv, bkv)
    jax.block_until_ready((out1, out2))

    ref1, ref2 = _reference(drug1, drug2, wq, bq, wkv, bkv)
    assert jnp.allclose(out1, ref1, atol=1e-5, rtol=1e-5)
    assert jnp.allclose(out2, ref2, atol=1e-5, rtol=1e-5)

    print("KERNEL_OK")
</pallas_src>

<mosaic_0001>
module attributes {stable_mosaic.version = 11 : i64} {
  func.func @cross_attention_kernel(%arg0: memref<8x16xf32, #tpu.memory_space<vmem>>, %arg1: memref<8x16xf32, #tpu.memory_space<vmem>>, %arg2: memref<64x16xf32, #tpu.memory_space<vmem>>, %arg3: memref<1x64xf32, #tpu.memory_space<vmem>>, %arg4: memref<8x32xf32, #tpu.memory_space<vmem>>, %arg5: memref<8x32xf32, #tpu.memory_space<vmem>>) attributes {dimension_semantics = [], scalar_prefetch = 0 : i64, scratch_operands = 0 : i64, tpu.core_type = #tpu.core_type<tc>} {
    %c0 = arith.constant 0 : index
    %c0_0 = arith.constant 0 : index
    %0 = vector.load %arg0[%c0, %c0_0] : memref<8x16xf32, #tpu.memory_space<vmem>>, vector<8x16xf32>
    %c0_1 = arith.constant 0 : index
    %c0_2 = arith.constant 0 : index
    %1 = vector.load %arg1[%c0_1, %c0_2] : memref<8x16xf32, #tpu.memory_space<vmem>>, vector<8x16xf32>
    %c0_3 = arith.constant 0 : index
    %c0_4 = arith.constant 0 : index
    %2 = vector.load %arg2[%c0_3, %c0_4] : memref<64x16xf32, #tpu.memory_space<vmem>>, vector<64x16xf32>
    %c0_5 = arith.constant 0 : index
    %c0_6 = arith.constant 0 : index
    %3 = vector.load %arg3[%c0_5, %c0_6] : memref<1x64xf32, #tpu.memory_space<vmem>>, vector<1x64xf32>
    %cst = arith.constant dense<0.000000e+00> : vector<8x64xf32>
    %4 = tpu.matmul %0, %2, %cst {dimension_numbers = #tpu.dot_dimension_numbers<[1], [1], [0], [0], [0, 0, 1, 0], [], []>} : vector<8x16xf32>, vector<64x16xf32>, vector<8x64xf32> -> vector<8x64xf32>
    %5 = vector.broadcast %3 : vector<1x64xf32> to vector<8x64xf32>
    %6 = arith.addf %4, %5 : vector<8x64xf32>
    %cst_7 = arith.constant dense<0.000000e+00> : vector<8x64xf32>
    %7 = tpu.matmul %1, %2, %cst_7 {dimension_numbers = #tpu.dot_dimension_numbers<[1], [1], [0], [0], [0, 0, 1, 0], [], []>} : vector<8x16xf32>, vector<64x16xf32>, vector<8x64xf32> -> vector<8x64xf32>
    %8 = vector.broadcast %3 : vector<1x64xf32> to vector<8x64xf32>
    %9 = arith.addf %7, %8 : vector<8x64xf32>
    %10 = vector.extract_strided_slice %6 {offsets = [0, 0], sizes = [8, 32], strides = [1, 1]} : vector<8x64xf32> to vector<8x32xf32>
    %11 = vector.extract_strided_slice %6 {offsets = [0, 32], sizes = [8, 32], strides = [1, 1]} : vector<8x64xf32> to vector<8x32xf32>
    %12 = vector.extract_strided_slice %9 {offsets = [0, 0], sizes = [8, 32], strides = [1, 1]} : vector<8x64xf32> to vector<8x32xf32>
    %13 = vector.extract_strided_slice %9 {offsets = [0, 32], sizes = [8, 32], strides = [1, 1]} : vector<8x64xf32> to vector<8x32xf32>
    %cst_8 = arith.constant dense<0.000000e+00> : vector<8x8xf32>
    %14 = tpu.matmul %10, %13, %cst_8 {dimension_numbers = #tpu.dot_dimension_numbers<[1], [1], [0], [0], [0, 0, 1, 0], [], []>} : vector<8x32xf32>, vector<8x32xf32>, vector<8x8xf32> -> vector<8x8xf32>
    %cst_9 = arith.constant 0.141421363 : f32
    %15 = vector.broadcast %cst_9 : f32 to vector<8x8xf32>
    %16 = arith.mulf %14, %15 : vector<8x8xf32>
    %cst_10 = arith.constant dense<0xFF800000> : vector<8xf32>
    %17 = vector.multi_reduction <maximumf>, %16, %cst_10 [1] : vector<8x8xf32> to vector<8xf32>
    %18 = vector.shape_cast %17 : vector<8xf32> to vector<8x1xf32>
    %19 = vector.broadcast %18 : vector<8x1xf32> to vector<8x8xf32>
    %20 = arith.subf %16, %19 : vector<8x8xf32>
    %21 = math.exp %20 : vector<8x8xf32>
    %cst_11 = arith.constant dense<0.000000e+00> : vector<8xf32>
    %22 = vector.multi_reduction <add>, %21, %cst_11 [1] : vector<8x8xf32> to vector<8xf32>
    %23 = vector.shape_cast %22 : vector<8xf32> to vector<8x1xf32>
    %24 = tpu.reciprocal %23 : vector<8x1xf32> -> vector<8x1xf32>
    %25 = vector.broadcast %24 : vector<8x1xf32> to vector<8x8xf32>
    %26 = arith.mulf %21, %25 : vector<8x8xf32>
    %cst_12 = arith.constant dense<0.000000e+00> : vector<8x32xf32>
    %27 = tpu.matmul %26, %13, %cst_12 {dimension_numbers = #tpu.dot_dimension_numbers<[1], [0], [0], [1], [0, 0, 1, 1], [], []>} : vector<8x8xf32>, vector<8x32xf32>, vector<8x32xf32> -> vector<8x32xf32>
    %c0_13 = arith.constant 0 : index
    %c0_14 = arith.constant 0 : index
    %28 = vector.load %arg4[%c0_13, %c0_14] : memref<8x32xf32, #tpu.memory_space<vmem>>, vector<8x32xf32>
    tpu.vector_store %arg4[%c0_13, %c0_14], %27 {strides = array<i32>} : memref<8x32xf32, #tpu.memory_space<vmem>>, vector<8x32xf32>,
    %cst_15 = arith.constant dense<0.000000e+00> : vector<8x8xf32>
    %29 = tpu.matmul %12, %11, %cst_15 {dimension_numbers = #tpu.dot_dimension_numbers<[1], [1], [0], [0], [0, 0, 1, 0], [], []>} : vector<8x32xf32>, vector<8x32xf32>, vector<8x8xf32> -> vector<8x8xf32>
    %cst_16 = arith.constant 0.141421363 : f32
    %30 = vector.broadcast %cst_16 : f32 to vector<8x8xf32>
    %31 = arith.mulf %29, %30 : vector<8x8xf32>
    %cst_17 = arith.constant dense<0xFF800000> : vector<8xf32>
    %32 = vector.multi_reduction <maximumf>, %31, %cst_17 [1] : vector<8x8xf32> to vector<8xf32>
    %33 = vector.shape_cast %32 : vector<8xf32> to vector<8x1xf32>
    %34 = vector.broadcast %33 : vector<8x1xf32> to vector<8x8xf32>
    %35 = arith.subf %31, %34 : vector<8x8xf32>
    %36 = math.exp %35 : vector<8x8xf32>
    %cst_18 = arith.constant dense<0.000000e+00> : vector<8xf32>
    %37 = vector.multi_reduction <add>, %36, %cst_18 [1] : vector<8x8xf32> to vector<8xf32>
    %38 = vector.shape_cast %37 : vector<8xf32> to vector<8x1xf32>
    %39 = tpu.reciprocal %38 : vector<8x1xf32> -> vector<8x1xf32>
    %40 = vector.broadcast %39 : vector<8x1xf32> to vector<8x8xf32>
    %41 = arith.mulf %36, %40 : vector<8x8xf32>
    %cst_19 = arith.constant dense<0.000000e+00> : vector<8x32xf32>
    %42 = tpu.matmul %41, %11, %cst_19 {dimension_numbers = #tpu.dot_dimension_numbers<[1], [0], [0], [1], [0, 0, 1, 1], [], []>} : vector<8x8xf32>, vector<8x32xf32>, vector<8x32xf32> -> vector<8x32xf32>
    %c0_20 = arith.constant 0 : index
    %c0_21 = arith.constant 0 : index
    %43 = vector.load %arg5[%c0_20, %c0_21] : memref<8x32xf32, #tpu.memory_space<vmem>>, vector<8x32xf32>
    tpu.vector_store %arg5[%c0_20, %c0_21], %42 {strides = array<i32>} : memref<8x32xf32, #tpu.memory_space<vmem>>, vector<8x32xf32>,
    return
  }
}

</mosaic_0001>

<bundles_post_ra>
// kernel: cross_attention.1
= control target key start
LH: loop header
LB: loop body
LE: loop exit
PB: predicated region body
PF: predicated region fallthrough
CT: control target
= control target key end

     0   :  { %11 = vsyncpa [#allocation3], 0  ;;  %vm35_vm0 = vcmask 130048   ;;  %s484_s0 = inlined_call_operand.vmem [shape: f32[8,16], index: 0, kind: input, shape index: {}]   ;;  %s485_s1 = inlined_call_operand.vmem [shape: f32[8,16], index: 1, kind: input, shape index: {}]   ;;  %s486_s2 = inlined_call_operand.vmem [shape: f32[64,16], index: 2, kind: input, shape index: {}]   ;;  %s487_s3 = inlined_call_operand.vmem [shape: f32[1,64], index: 3, kind: input, shape index: {}]   ;;  %s488_s4 = inlined_call_operand.hbm [shape: f32[8,32], index: 4, kind: output, shape index: {0}]   ;;  %s489_s5 = inlined_call_operand.hbm [shape: f32[8,32], index: 5, kind: output, shape index: {1}]  }
   0x1   :  { %v30_v0 = vld [vmem:[%s486_s2 + $0x38] sm:$0xff]  ;;  %v29_v1 = vld [vmem:[%s486_s2 + $0x30] sm:$0xff] }
   0x2   :  { %303 = vmatpush.xpose.msk.msra.mxu1 %vm35_vm0, %v30_v0  ;;  %294 = vmatpush.xpose.msk.msra.mxu0 %vm35_vm0, %v30_v0 }
   0x3   :  { %12 = vsyncpa [#allocation5], 0  ;;  %v28_v2 = vld [vmem:[%s486_s2 + $0x28] sm:$0xff]  ;;  %v27_v3 = vld [vmem:[%s486_s2 + $0x20] sm:$0xff]  ;;  %vm109_vm1 = vcmask 261120   ;;  %vm136_vm2 = vcmask 64512  }
   0x4   :  { %v26_v4 = vld [vmem:[%s486_s2 + $0x18] sm:$0xff]  ;;  %v25_v5 = vld [vmem:[%s486_s2 + $0x10] sm:$0xff]  ;;  %v24_v6 = vld [vmem:[%s486_s2 + $0x8] sm:$0xff]  ;;  %s269_s16 = sshll.u32 %s488_s4, 4  ;;  %s384_s17 = smov [#allocation4]   ;;  %s270_s16 = int_to_ptr.hbm [resolvable:$true] %s269_s16 }
   0x5   :  { %v23_v7 = vld [vmem:[%s486_s2] sm:$0xff]  ;;  %s382_s2 = smov 96   ;;  %s278_s18 = sshll.u32 %s384_s17, 4  ;;  %s279_s18 = int_to_ptr.vmem [resolvable:$true] %s278_s18 }
   0x6   :  { %304 = vmatpush.xpose.msk.msra.mxu1 %vm35_vm0, %v29_v1  ;;  %295 = vmatpush.xpose.msk.msra.mxu0 %vm35_vm0, %v29_v1  ;;  %v22_v8 = vld [vmem:[%s485_s1] sm:$0xff]  ;;  %s280_s21 = sshll.u32 %s489_s5, 4  ;;  %s281_s21 = int_to_ptr.hbm [resolvable:$true] %s280_s21 }
   0x7   :  { %v21_v9 = vld [vmem:[%s484_s0] sm:$0xff]  ;;  %s383_s0 = smov [#allocation2]  }
   0x8   :  { %v321_v10 = vld [vmem:[%s487_s3] ss:$0 sm:$0xff]  ;;  %s267_s1 = sshll.u32 %s383_s0, 4  ;;  %s268_s1 = int_to_ptr.vmem [resolvable:$true] %s267_s1 }
   0xa   :  { %305 = vmatpush.xpose.msk.msra.mxu1 %vm35_vm0, %v28_v2  ;;  %296 = vmatpush.xpose.msk.msra.mxu0 %vm35_vm0, %v28_v2 }
   0xe   :  { %306 = vmatpush.xpose.msk.msra.mxu1 %vm35_vm0, %v27_v3  ;;  %297 = vmatpush.xpose.msk.msra.mxu0 %vm35_vm0, %v27_v3 }
  0x12   :  { %307 = vmatpush.xpose.msk.msra.mxu1 %vm35_vm0, %v26_v4  ;;  %298 = vmatpush.xpose.msk.msra.mxu0 %vm35_vm0, %v26_v4 }
  0x16   :  { %308 = vmatpush.xpose.msk.msra.mxu1 %vm35_vm0, %v25_v5  ;;  %299 = vmatpush.xpose.msk.msra.mxu0 %vm35_vm0, %v25_v5 }
  0x1a   :  { %309 = vmatpush.xpose.msk.msra.mxu1 %vm35_vm0, %v24_v6  ;;  %300 = vmatpush.xpose.msk.msra.mxu0 %vm35_vm0, %v24_v6 }
  0x1e   :  { %310 = vmatpush.xpose.msk.msra.mxu1 %vm35_vm0, %v23_v7  ;;  %301 = vmatpush.xpose.msk.msra.mxu0 %vm35_vm0, %v23_v7 }
  0x21   :  { %311 = vmatmul.msk.f32.vlgmr.msra.gmra.mxu1 %vm35_vm0, %v22_v8  ;;  %302 = vmatmul.msk.f32.vlgmr.msra.gmra.mxu0 %vm35_vm0, %v21_v9 }
  0x9e   :  { %v103_v11 = vpop.f32.mrf.mxu1  ;;  %v80_v13 = vpop.f32.mrf.mxu0 }
  0x9f   :  { %v104_v12 = vadd.f32 %v321_v10, %v103_v11  ;;  %v81_v15 = vadd.f32 %v321_v10, %v80_v13 }
  0xa1   :  { %107 = vrot.lane.b32.xlu0 %v104_v12, %s382_s2 }
 0x113   :  { %v108_v14 = vpop.permute.xlu0 %107 }
 0x114   :  { %312 = vmatpush.xpose.msk.msra.mxu2 %vm109_vm1, %v108_v14  ;;  %180 = vmatpush.msra.mxu3 %v108_v14 }
 0x117   :  { %313 = vmatmul.msk.f32.vlgmr.msra.gmra.mxu2 %vm109_vm1, %v81_v15 }
 0x19a   :  { %v132_v16 = vpop.f32.mrf.mxu2 }
 0x19b   :  { %v135_v17 = vmul.f32 0.14142136, %v132_v16 }
 0x19d   :  { %v137_v18 = vsel %vm136_vm2, %v135_v17, -inf }
 0x19e   :  { %138 = vmax.xlane.f32.xlu0 %v137_v18 }
 0x211   :  { %v139_v19 = vpop.xlane.xlu0 %138 }
 0x212   :  { %v140_v20 = vsub.f32 %v135_v17, %v139_v19 }
 0x214   :  { %v141_v21 = vmul.f32 1.442695, %v140_v20 }
 0x216   :  { %322 = vpow2.f32 %v141_v21 }
 0x21c   :  { %v323_v22 = vpop.eup %322 }
 0x21d   :  { %v143_v23 = vsel %vm136_vm2, %v323_v22, 0.0 }
 0x21e   :  { %144 = vadd.xlane.f32.xlu1 %v143_v23 }
 0x237   :  { %186 = vrot.lane.b32.xlu1 %v81_v15, %s382_s2 }
 0x291   :  { %v145_v24 = vpop.xlane.xlu1 %144 }
 0x292   :  { %324 = vrcp.f32 %v145_v24  ;;  %v157_v28 = vand.u32 2147483648, %v145_v24  ;;  %v155_v30 = vand.u32 2147483647, %v145_v24  ;;  %vm151_vm4 = vweird.f32 %v145_v24 }
 0x294   :  { %v158_v32 = vor.u32 1.1754944e-38, %v157_v28  ;;  %vm156_vm6 = vcmp.eq.f32.partialorder %v155_v30, 8.507059e+37 }
 0x298   :  { %v325_v25 = vpop.eup %324 }
 0x299   :  { %v147_v26 = vmul.f32 %v325_v25, %v145_v24  ;;  %vm152_vm3 = vweird.f32 %v325_v25 }
 0x29a   :  { %vm153_vm5 = vmor %vm151_vm4, %vm152_vm3 }
 0x29b   :  { %v148_v27 = vsub.f32 1.0, %v147_v26 }
 0x29d   :  { %v149_v29 = vmul.f32 %v325_v25, %v148_v27 }
 0x29f   :  { %v150_v31 = vadd.f32 %v325_v25, %v149_v29 }
 0x2a1   :  { %v154_v33 = vsel %vm153_vm5, %v325_v25, %v150_v31 }
 0x2a2   :  { %v159_v34 = vsel %vm156_vm6, %v158_v32, %v154_v33 }
 0x2a3   :  { %v160_v35 = vmul.f32 %v323_v22, %v159_v34 }
 0x2a5   :  { %314 = vmatmul.msk.f32.vlgmr.msra.gmra.mxu3 %vm136_vm2, %v160_v35 }
 0x2a9   :  { %v187_v36 = vpop.permute.xlu1 %186 }
 0x2aa   :  { %315 = vmatpush.xpose.msk.msrb.mxu3 %vm109_vm1, %v187_v36  ;;  %256 = vmatpush.msrb.mxu2 %v187_v36 }
 0x2ad   :  { %316 = vmatmul.msk.f32.vlgmr.msrb.gmra.mxu3 %vm109_vm1, %v104_v12 }
 0x328   :  { %v182_v37 = vpop.f32.mrf.mxu3 }
 0x329   :  { %185 = vst.msk [vmem:[#allocation2] sm:$0xff] %vm109_vm1, %v182_v37 }
 0x32a   :  { %272 = dma.vmem_to_hbm [thread:$0]  %s268_s1, 128, %s270_s16, [#allocation3]  }
 0x330   :  { %v209_v38 = vpop.f32.mrf.mxu3 }
 0x331   :  { %v212_v39 = vmul.f32 0.14142136, %v209_v38 }
 0x333   :  { %v213_v40 = vsel %vm136_vm2, %v212_v39, -inf }
 0x334   :  { %214 = vmax.xlane.f32.xlu2 %v213_v40 }
 0x3a7   :  { %v215_v41 = vpop.xlane.xlu2 %214 }
 0x3a8   :  { %v216_v42 = vsub.f32 %v212_v39, %v215_v41 }
 0x3aa   :  { %v217_v43 = vmul.f32 1.442695, %v216_v42 }
 0x3ac   :  { %326 = vpow2.f32 %v217_v43 }
 0x3b2   :  { %v327_v44 = vpop.eup %326 }
 0x3b3   :  { %v219_v45 = vsel %vm136_vm2, %v327_v44, 0.0 }
 0x3b4   :  { %220 = vadd.xlane.f32.xlu2 %v219_v45 }
 0x427   :  { %v221_v46 = vpop.xlane.xlu2 %220 }
 0x428   :  { %328 = vrcp.f32 %v221_v46  ;;  %v233_v50 = vand.u32 2147483648, %v221_v46  ;;  %v231_v52 = vand.u32 2147483647, %v221_v46  ;;  %vm227_vm8 = vweird.f32 %v221_v46 }
 0x42a   :  { %v234_v54 = vor.u32 1.1754944e-38, %v233_v50  ;;  %vm232_vm10 = vcmp.eq.f32.partialorder %v231_v52, 8.507059e+37 }
 0x42e   :  { %v329_v47 = vpop.eup %328 }
 0x42f   :  { %v223_v48 = vmul.f32 %v329_v47, %v221_v46  ;;  %vm228_vm7 = vweird.f32 %v329_v47 }
 0x430   :  { %vm229_vm9 = vmor %vm227_vm8, %vm228_vm7 }
 0x431   :  { %v224_v49 = vsub.f32 1.0, %v223_v48 }
 0x433   :  { %v225_v51 = vmul.f32 %v329_v47, %v224_v49 }
 0x435   :  { %v226_v53 = vadd.f32 %v329_v47, %v225_v51 }
 0x437   :  { %v230_v55 = vsel %vm229_vm9, %v329_v47, %v226_v53 }
 0x438   :  { %v235_v56 = vsel %vm232_vm10, %v234_v54, %v230_v55 }
 0x439   :  { %v236_v57 = vmul.f32 %v327_v44, %v235_v56 }
 0x43b   :  { %317 = vmatmul.msk.f32.vlgmr.msrb.gmra.mxu2 %vm136_vm2, %v236_v57 }
 0x4be   :  { %v258_v58 = vpop.f32.mrf.mxu2 }
 0x4bf   :  { %261 = vst.msk [vmem:[#allocation4] sm:$0xff] %vm109_vm1, %v258_v58 }
 0x4c0   :  { %283 = dma.vmem_to_hbm [thread:$0]  %s279_s18, 128, %s281_s21, [#allocation5]  }
 0x4c1   :  { %378 = dma.done.wait [#allocation3], 128  }
 0x4c2   :  { %379 = vsyncadd [#allocation3], 4294967168 }
 0x4c3   :  { %380 = dma.done.wait [#allocation5], 128  }
 0x4c4   :  { %381 = vsyncadd [#allocation5], 4294967168 }
 0x4c5   :  { %292 = vsyncpa [#allocation3], 1 }
 0x4c6   :  { %293 = vsyncpa [#allocation5], 1 }

</bundles_post_ra>
